<compile_context>
chip_gen: v7x
topology: tpu7x:2x2x1
jax: 0.10.0
libtpu: 0.0.40
codegen_flags: <defaults>
</compile_context>

<pallas_src>
import jax
import jax.numpy as jnp
from jax.experimental import pallas as pl
from jax.experimental.pallas import tpu as pltpu


def _mlp_kernel(x_ref, w1_ref, b1_ref, w2_ref, b2_ref, o_ref):
    # x_ref: (tm, D_in), w1_ref: (D_in, H), b1_ref: (1, H),
    # w2_ref: (H, D_out), b2_ref: (1, D_out), o_ref: (tm, D_out)
    h = jnp.dot(x_ref[...], w1_ref[...], preferred_element_type=jnp.float32)
    h = jnp.maximum(h + b1_ref[...], 0.0)
    out = jnp.dot(h, w2_ref[...], preferred_element_type=jnp.float32)
    out = out + b2_ref[...]
    o_ref[...] = out.astype(o_ref.dtype)


def _round_up(x, m):
    return ((x + m - 1) // m) * m


def edge_embedding_projection(edge_embedding, w1, b1, w2, b2, *, tm=2048):
    """Pallas implementation of EdgeEmbeddingProjection.forward.

    edge_embedding: (num_edges, in_embedding_dim) float32
    w1: (in_embedding_dim, hidden), b1: (hidden,)
    w2: (hidden, out_dimension),    b2: (out_dimension,)
    returns: (num_edges, out_dimension) float32
    """
    n, d_in = edge_embedding.shape
    hidden = w1.shape[1]
    d_out = w2.shape[1]

    # Row tile: multiple of 8 (sublane granularity), capped at `tm`, and also
    # capped at ~half the rows so the parallel grid axis has >= 2 steps when
    # possible (lets v7x shard the row loop across its two TensorCores).
    half = _round_up(pl.cdiv(n, 2), 8)
    tm_eff = max(8, min(tm, half))

    # Handle arbitrary num_edges: pad rows only if the tile doesn't divide n.
    n_pad = _round_up(n, tm_eff)
    x = edge_embedding
    if n_pad != n:
        x = jnp.pad(x, ((0, n_pad - n), (0, 0)))

    # Keep biases 2D so their blocks are well-formed (1, H) / (1, D_out).
    b1_2d = b1.reshape(1, hidden)
    b2_2d = b2.reshape(1, d_out)

    grid = (n_pad // tm_eff,)

    out = pl.pallas_call(
        _mlp_kernel,
        out_shape=jax.ShapeDtypeStruct((n_pad, d_out), edge_embedding.dtype),
        grid_spec=pltpu.PrefetchScalarGridSpec(
            num_scalar_prefetch=0,
            grid=grid,
            in_specs=[
                pl.BlockSpec((tm_eff, d_in), lambda i: (i, 0)),   # x tile
                pl.BlockSpec((d_in, hidden), lambda i: (0, 0)),   # W1 (resident)
                pl.BlockSpec((1, hidden), lambda i: (0, 0)),      # b1 (resident)
                pl.BlockSpec((hidden, d_out), lambda i: (0, 0)),  # W2 (resident)
                pl.BlockSpec((1, d_out), lambda i: (0, 0)),       # b2 (resident)
            ],
            out_specs=pl.BlockSpec((tm_eff, d_out), lambda i: (i, 0)),
        ),
        compiler_params=pltpu.CompilerParams(
            dimension_semantics=("parallel",)),
    )(x, w1, b1_2d, w2, b2_2d)

    if n_pad != n:
        out = out[:n]
    return out


def init_params(key, in_embedding_dim, out_dimension, hidden=32):
    """Deterministic init mimicking nn.Linear default (uniform in +/- 1/sqrt(fan_in))."""
    k1, k2, k3, k4 = jax.random.split(key, 4)
    bound1 = 1.0 / jnp.sqrt(in_embedding_dim)
    bound2 = 1.0 / jnp.sqrt(hidden)
    w1 = jax.random.uniform(k1, (in_embedding_dim, hidden), jnp.float32,
                            -bound1, bound1)
    b1 = jax.random.uniform(k2, (hidden,), jnp.float32, -bound1, bound1)
    w2 = jax.random.uniform(k3, (hidden, out_dimension), jnp.float32,
                            -bound2, bound2)
    b2 = jax.random.uniform(k4, (out_dimension,), jnp.float32, -bound2, bound2)
    return w1, b1, w2, b2


if __name__ == "__main__":
    num_edges = 64
    in_embedding_dim = 32
    out_dimension = 20

    key = jax.random.PRNGKey(0)
    k_x, k_p = jax.random.split(key)

    edge_embedding = jax.random.normal(
        k_x, (num_edges, in_embedding_dim), dtype=jnp.float32)
    w1, b1, w2, b2 = init_params(k_p, in_embedding_dim, out_dimension)

    out = edge_embedding_projection(edge_embedding, w1, b1, w2, b2)
    out = jax.block_until_ready(out)

    # Reference check in plain JAX (same math as the PyTorch module).
    ref = jnp.maximum(edge_embedding @ w1 + b1, 0.0) @ w2 + b2
    assert out.shape == (num_edges, out_dimension)
    assert jnp.allclose(out, ref, atol=1e-5, rtol=1e-5)

    # Also exercise a non-tile-divisible edge count to validate the padding path.
    odd_n = 37
    x_odd = jax.random.normal(k_x, (odd_n, in_embedding_dim), dtype=jnp.float32)
    out_odd = jax.block_until_ready(
        edge_embedding_projection(x_odd, w1, b1, w2, b2))
    ref_odd = jnp.maximum(x_odd @ w1 + b1, 0.0) @ w2 + b2
    assert out_odd.shape == (odd_n, out_dimension)
    assert jnp.allclose(out_odd, ref_odd, atol=1e-5, rtol=1e-5)

    print("KERNEL_OK")
</pallas_src>

<mosaic_0001>
module attributes {stable_mosaic.version = 11 : i64} {
  func.func @_mlp_kernel(%arg0: i32, %arg1: memref<32x32xf32, #tpu.memory_space<vmem>>, %arg2: memref<32x32xf32, #tpu.memory_space<vmem>>, %arg3: memref<1x32xf32, #tpu.memory_space<vmem>>, %arg4: memref<32x20xf32, #tpu.memory_space<vmem>>, %arg5: memref<1x20xf32, #tpu.memory_space<vmem>>, %arg6: memref<32x20xf32, #tpu.memory_space<vmem>>) attributes {dimension_semantics = [#tpu.dimension_semantics<parallel>], iteration_bounds = array<i64: 2>, scalar_prefetch = 0 : i64, scratch_operands = 0 : i64, tpu.core_type = #tpu.core_type<tc>, window_params = [{transform_indices = @transform_0, window_bounds = array<i64: 32, 32>}, {pipeline_mode = #tpu.pipeline_mode<synchronous>, transform_indices = @transform_1, window_bounds = array<i64: 32, 32>}, {pipeline_mode = #tpu.pipeline_mode<synchronous>, transform_indices = @transform_2, window_bounds = array<i64: 1, 32>}, {pipeline_mode = #tpu.pipeline_mode<synchronous>, transform_indices = @transform_3, window_bounds = array<i64: 32, 20>}, {pipeline_mode = #tpu.pipeline_mode<synchronous>, transform_indices = @transform_4, window_bounds = array<i64: 1, 20>}, {transform_indices = @transform_5, window_bounds = array<i64: 32, 20>}]} {
    %c0 = arith.constant 0 : index
    %c0_0 = arith.constant 0 : index
    %0 = vector.load %arg1[%c0, %c0_0] : memref<32x32xf32, #tpu.memory_space<vmem>>, vector<32x32xf32>
    %c0_1 = arith.constant 0 : index
    %c0_2 = arith.constant 0 : index
    %1 = vector.load %arg2[%c0_1, %c0_2] : memref<32x32xf32, #tpu.memory_space<vmem>>, vector<32x32xf32>
    %cst = arith.constant dense<0.000000e+00> : vector<32x32xf32>
    %2 = tpu.matmul %0, %1, %cst {dimension_numbers = #tpu.dot_dimension_numbers<[1], [0], [0], [1], [0, 0, 1, 1], [], []>} : vector<32x32xf32>, vector<32x32xf32>, vector<32x32xf32> -> vector<32x32xf32>
    %c0_3 = arith.constant 0 : index
    %c0_4 = arith.constant 0 : index
    %3 = vector.load %arg3[%c0_3, %c0_4] : memref<1x32xf32, #tpu.memory_space<vmem>>, vector<1x32xf32>
    %4 = vector.broadcast %3 : vector<1x32xf32> to vector<32x32xf32>
    %5 = arith.addf %2, %4 : vector<32x32xf32>
    %cst_5 = arith.constant 0.000000e+00 : f32
    %6 = vector.broadcast %cst_5 : f32 to vector<32x32xf32>
    %7 = arith.maximumf %5, %6 : vector<32x32xf32>
    %c0_6 = arith.constant 0 : index
    %c0_7 = arith.constant 0 : index
    %8 = vector.load %arg4[%c0_6, %c0_7] : memref<32x20xf32, #tpu.memory_space<vmem>>, vector<32x20xf32>
    %cst_8 = arith.constant dense<0.000000e+00> : vector<32x20xf32>
    %9 = tpu.matmul %7, %8, %cst_8 {dimension_numbers = #tpu.dot_dimension_numbers<[1], [0], [0], [1], [0, 0, 1, 1], [], []>} : vector<32x32xf32>, vector<32x20xf32>, vector<32x20xf32> -> vector<32x20xf32>
    %c0_9 = arith.constant 0 : index
    %c0_10 = arith.constant 0 : index
    %10 = vector.load %arg5[%c0_9, %c0_10] : memref<1x20xf32, #tpu.memory_space<vmem>>, vector<1x20xf32>
    %11 = vector.broadcast %10 : vector<1x20xf32> to vector<32x20xf32>
    %12 = arith.addf %9, %11 : vector<32x20xf32>
    %c0_11 = arith.constant 0 : index
    %c0_12 = arith.constant 0 : index
    %13 = vector.load %arg6[%c0_11, %c0_12] : memref<32x20xf32, #tpu.memory_space<vmem>>, vector<32x20xf32>
    tpu.vector_store %arg6[%c0_11, %c0_12], %12 {strides = array<i32>} : memref<32x20xf32, #tpu.memory_space<vmem>>, vector<32x20xf32>,
    return
  }
  func.func @transform_0(%arg0: i32) -> (i32, i32) {
    %c0_i32 = arith.constant 0 : i32
    %c0_i32_0 = arith.constant 0 : i32
    return %arg0, %c0_i32 : i32, i32
  }
  func.func @transform_1(%arg0: i32) -> (i32, i32) {
    %c0_i32 = arith.constant 0 : i32
    %c0_i32_0 = arith.constant 0 : i32
    %c0_i32_1 = arith.constant 0 : i32
    return %c0_i32, %c0_i32_0 : i32, i32
  }
  func.func @transform_2(%arg0: i32) -> (i32, i32) {
    %c0_i32 = arith.constant 0 : i32
    %c0_i32_0 = arith.constant 0 : i32
    %c0_i32_1 = arith.constant 0 : i32
    return %c0_i32, %c0_i32_0 : i32, i32
  }
  func.func @transform_3(%arg0: i32) -> (i32, i32) {
    %c0_i32 = arith.constant 0 : i32
    %c0_i32_0 = arith.constant 0 : i32
    %c0_i32_1 = arith.constant 0 : i32
    return %c0_i32, %c0_i32_0 : i32, i32
  }
  func.func @transform_4(%arg0: i32) -> (i32, i32) {
    %c0_i32 = arith.constant 0 : i32
    %c0_i32_0 = arith.constant 0 : i32
    %c0_i32_1 = arith.constant 0 : i32
    return %c0_i32, %c0_i32_0 : i32, i32
  }
  func.func @transform_5(%arg0: i32) -> (i32, i32) {
    %c0_i32 = arith.constant 0 : i32
    %c0_i32_0 = arith.constant 0 : i32
    return %arg0, %c0_i32 : i32, i32
  }
}

</mosaic_0001>

<bundles_post_ra>
// kernel: tpu_custom_call.1
= control target key start
LH: loop header
LB: loop body
LE: loop exit
PB: predicated region body
PF: predicated region fallthrough
CT: control target
= control target key end

     0   :  { %s641_s18 = smov 0   ;;  %s703_s0 = inlined_call_operand.vmem [shape: f32[64,32], index: 0, kind: input, shape index: {}]   ;;  %s704_s1 = inlined_call_operand.vmem [shape: f32[32,32], index: 1, kind: input, shape index: {}]   ;;  %s705_s2 = inlined_call_operand.vmem [shape: f32[1,32], index: 2, kind: input, shape index: {}]   ;;  %s706_s3 = inlined_call_operand.vmem [shape: f32[32,20], index: 3, kind: input, shape index: {}]   ;;  %s707_s4 = inlined_call_operand.vmem [shape: f32[1,20], index: 4, kind: input, shape index: {}]   ;;  %s708_s5 = inlined_call_operand.vmem [shape: f32[64,20], index: 5, kind: output, shape index: {}]  }
   0x1 LB: > { %s514_s19 = sadd.s32 4294967295, %s609_s18   ;;  %p518_p0 = scmp.ge.s32.totalorder %s609_s18, 1  ;;  %s609_s18 = sphi %s641_s18, %s15_s18  }
   0x2   : > { %p188_p1 = scmp.lt.s32.totalorder %s609_s18, 3 }
   0x4   : > { %p189_p2 = pnand %p518_p0, %p188_p1 }
   0x5   : > { %v232_v0 = vld [vmem:[%s704_s1] sm:$0xff] (!%p189_p2)  ;;  %v233_v1 = vld [vmem:[%s704_s1 + $0x8] sm:$0xff] (!%p189_p2)  ;;  %v234_v2 = vld [vmem:[%s704_s1 + $0x10] sm:$0xff] (!%p189_p2)  ;;  %s519_s26 = sshll.u32 (!%p189_p2), %s514_s19, 2  ;;  %vm243_vm0 = vcmask (!%p189_p2), 261120   ;;  %vm453_vm1 = vcmask (!%p189_p2), 162816  }
   0x6   : > { %192 = sbr.rel (%p189_p2) target bundleno = 456 (0x1c8), region = 40  ;;  %v579_v3 = vpack.c.bf16 (!%p189_p2), %v233_v1, %v232_v0  ;;  %v235_v4 = vld [vmem:[%s704_s1 + $0x18] sm:$0xff] (!%p189_p2)  ;;  %p217_p3 = scmp.lt.s32.totalorder (!%p189_p2), %s519_s26, 7  ;;  %v345_v5 = vld [vmem:[%s706_s3] sm:$0xff] (!%p189_p2)  ;;  %v346_v6 = vld [vmem:[%s706_s3 + $0x8] sm:$0xff] (!%p189_p2) }
   0x7   : > { %v583_v7 = vpack.c.bf16 (!%p189_p2), %v235_v4, %v234_v2  ;;  %v587_v8 = vpack.c.bf16 (!%p189_p2), %v346_v6, %v345_v5  ;;  %v347_v13 = vld [vmem:[%s706_s3 + $0x10] sm:$0xff] (!%p189_p2)  ;;  %v348_v14 = vld [vmem:[%s706_s3 + $0x18] sm:$0xff] (!%p189_p2)  ;;  %v523_v16 = vld [vmem:[%s705_s2] ss:$0 sm:$0xff] (!%p189_p2) }
   0x8   : > { %580 = vmatprep.subr.bf16.mxu0 (!%p189_p2), %v579_v3  ;;  %v591_v15 = vpack.c.bf16 (!%p189_p2), %v348_v14, %v347_v13  ;;  %v528_v29 = vld [vmem:[%s707_s4] ss:$0 sm:$0xff] (!%p189_p2) }
   0x9   : > { %582 = vmatpush3.bf16.msra.mxu0 (!%p189_p2), %v579_v3  ;;  %588 = vmatprep.subr.bf16.mxu1 (!%p189_p2), %v587_v8 }
   0xa   : > { %584 = vmatprep.subr.bf16.mxu0 (!%p189_p2), %v583_v7  ;;  %590 = vmatpush3.bf16.msra.mxu1 (!%p189_p2), %v587_v8 }
   0xb   : > { %592 = vmatprep.subr.bf16.mxu1 (!%p189_p2), %v591_v15 }
   0xd   : > { %s710_s26 = smov (!%p217_p3, %s519_s26), 7  ;;  %586 = vmatpush3.bf16.msra.mxu0 %v583_v7 }
   0xe   : > { %s520_s8 = sshll.u32 %s710_s26, 3  ;;  %594 = vmatpush3.bf16.msra.mxu1 %v591_v15 }
   0xf   : > { %s220_s11 = scalar_lea.vmem %s703_s0, %s520_s8  ;;  %s226_s23 = scalar_lea.vmem %s708_s5, %s520_s8 }
  0x10   : > { %v228_v9 = vld [vmem:[%s220_s11] sm:$0xff]  ;;  %v229_v10 = vld [vmem:[%s220_s11 + $0x8] sm:$0xff]  ;;  %v230_v11 = vld [vmem:[%s220_s11 + $0x10] sm:$0xff] }
  0x11   : > { %559 = vmatprep.mubr.msk.f32.mxu0 %vm243_vm0, %v228_v9  ;;  %v231_v12 = vld [vmem:[%s220_s11 + $0x18] sm:$0xff] }
  0x12   : > { %560 = vmatmul.mubr.msk.f32.vlgmr.msra.gmra.mrb[0].mxu0 %vm243_vm0, %v229_v10 }
  0x13   : > { %562 = vmatprep.mubr.msk.f32.mxu0 %vm243_vm0, %v230_v11 }
  0x16   : > { %563 = vmatmul.mubr.msk.f32.gmra.mrb[2].mxu0 %vm243_vm0, %v231_v12 }
  0xe5   : > { %v561_v17 = vpop.f32.mrb[0].mxu0 }
  0xe6   : > { %v328_v18 = vadd.f32 %v561_v17, %v523_v16  ;;  %v322_v19 = vpop.f32.mrb[1].mxu0 }
  0xe7   : > { %v323_v20 = vadd.f32 %v523_v16, %v322_v19 }
  0xe8   : > { %v342_v23 = vmax.f32 %v328_v18, 0.0 }
  0xe9   : > { %v341_v21 = vmax.f32 %v323_v20, 0.0  ;;  %v564_v22 = vpop.f32.mrb[2].mxu0 }
  0xea   : > { %v338_v24 = vadd.f32 %v564_v22, %v523_v16  ;;  %v332_v25 = vpop.f32.mrb[3].mxu0 }
  0xeb   : > { %v333_v26 = vadd.f32 %v523_v16, %v332_v25  ;;  %573 = vmatprep.mubr.msk.f32.mxu1 %vm243_vm0, %v341_v21 }
  0xec   : > { %574 = vmatmul.mubr.msk.f32.vlgmr.msra.gmra.mrb[0].mxu1 %vm243_vm0, %v342_v23  ;;  %v344_v28 = vmax.f32 %v338_v24, 0.0 }
  0xed   : > { %v343_v27 = vmax.f32 %v333_v26, 0.0 }
  0xef   : > { %576 = vmatprep.mubr.msk.f32.mxu1 %vm243_vm0, %v343_v27 }
  0xf0   : > { %577 = vmatmul.mubr.msk.f32.gmra.mrb[2].mxu1 %vm243_vm0, %v344_v28 }
 0x1bf   : > { %v575_v30 = vpop.f32.mrb[0].mxu1 }
 0x1c0   : > { %v434_v31 = vpop.f32.mrb[1].mxu1  ;;  %v440_v33 = vadd.f32 %v575_v30, %v528_v29 }
 0x1c1   : > { %v435_v32 = vadd.f32 %v528_v29, %v434_v31 }
 0x1c2   : > { %455 = vst.msk [vmem:[%s226_s23 + $0x8] sm:$0xff] %vm453_vm1, %v440_v33 }
 0x1c3   : > { %454 = vst.msk [vmem:[%s226_s23] sm:$0xff] %vm453_vm1, %v435_v32  ;;  %v578_v34 = vpop.f32.mrb[2].mxu1 }
 0x1c4   : > { %v444_v35 = vpop.f32.mrb[3].mxu1  ;;  %v450_v37 = vadd.f32 %v578_v34, %v528_v29 }
 0x1c5   : > { %v445_v36 = vadd.f32 %v528_v29, %v444_v35 }
 0x1c6   : > { %457 = vst.msk [vmem:[%s226_s23 + $0x18] sm:$0xff] %vm453_vm1, %v450_v37 }
 0x1c7   : > { %456 = vst.msk [vmem:[%s226_s23 + $0x10] sm:$0xff] %vm453_vm1, %v445_v36 }
 0x1c8 PF: > { %s15_s18 = sadd.s32 1, %s609_s18  }
 0x1c9   : > { %p12_p4 = scmp.ge.s32.totalorder %s15_s18, 4  }
 0x1cb   :  { %14 = sbr.rel (!%p12_p4) target bundleno = 1 (0x1), region = 70 }

</bundles_post_ra>
